<compile_context>
chip_gen: v5e
topology: v5e:2x2
jax: 0.10.0
libtpu: 0.0.40
codegen_flags: <defaults>
</compile_context>

<pallas_src>
import math
import jax
import jax.numpy as jnp
from jax import lax
from jax.experimental import pallas as pl
from jax.experimental.pallas import tpu as pltpu


LANE = 128


def _round_up(x, m):
    return ((x + m - 1) // m) * m


def _cdiv(a, b):
    return (a + b - 1) // b


def _pick_tiling(nl, ck_pad, co_pad, max_lane_tile, vmem_tile_budget, n_split_target=2):
    """Balanced lane tiling: tile sized from VMEM budget, padded extent = tile * n_tiles."""
    nl128 = _round_up(max(nl, 1), LANE)
    m = nl128 // LANE                                   # number of 128-lane groups
    # pass-2 double-buffered bytes per lane: xcol (bf16) + output block (f32)
    per_lane = 2 * (ck_pad * 2 + co_pad * 4)
    budget_groups = max(vmem_tile_budget // (per_lane * LANE), 1)
    t0g = max(min(budget_groups, max_lane_tile // LANE), 1)
    n_tiles_raw = _cdiv(m, t0g)
    n_split = n_split_target if n_tiles_raw >= n_split_target else 1
    n_tiles = _round_up(n_tiles_raw, n_split)
    tile_g = _cdiv(m, n_tiles)                          # balanced -> no ~2x tail waste
    tile = tile_g * LANE
    nl_pad = tile * n_tiles
    return tile, n_tiles, n_split, nl_pad


# ---------------- Pass 1: Gram accumulation (stats only, no y written) ----------------
def _gram_kernel(xcol_ref, g_ref):
    # xcol_ref: (ck_pad, tile) bf16   g_ref: (ck_pad, ck_pad) f32 resident accumulator
    @pl.when(pl.program_id(1) == 0)
    def _():
        g_ref[...] = jnp.zeros_like(g_ref)

    xt = xcol_ref[...]
    # G += xt @ xt^T on the MXU: contract the lane axis of both operands, f32 accumulate.
    g_ref[...] += lax.dot_general(
        xt, xt, (((1,), (1,)), ((), ())), preferred_element_type=jnp.float32)


# ---------------- Pass 2: conv matmul + fused BatchNorm FMA + ReLU --------------------
def _conv_bn_relu_kernel(xcol_ref, w_ref, ss_ref, o_ref):
    # xcol_ref: (ck_pad, tile) bf16   w_ref: (co_pad, ck_pad) bf16
    # ss_ref:   (co_pad, 2) f32 [scale | shift]   o_ref: (co_pad, tile)
    y = jnp.dot(w_ref[...], xcol_ref[...], preferred_element_type=jnp.float32)
    ss = ss_ref[...]
    scale = ss[:, 0:1]
    shift = ss[:, 1:2]
    o_ref[...] = jnp.maximum(y * scale + shift, 0.0).astype(o_ref.dtype)


def conv_block_forward(x, weight, bias, gamma, beta, *, stride, padding,
                       eps=1e-5, max_lane_tile=4096,
                       vmem_tile_budget=12 * 1024 * 1024,
                       compute_dtype=jnp.bfloat16,
                       pass1_input_buffers=2):
    """x: (N, C_in, L) f32. weight: (C_out, C_in, K). Returns (N, C_out, L_out)."""
    N, C_in, L = x.shape
    C_out, _, K = weight.shape
    L_out = (L + 2 * padding - K) // stride + 1
    nl = N * L_out

    ck = C_in * K
    # +1 row of ones rides the Gram matmul to give the per-(cin,k) column sums for free.
    # bf16 operands pack (16,128) -> round padded sublane dims to 16.
    ck_pad = _round_up(ck + 1, 16)
    co_pad = _round_up(C_out, 16)

    tile, n_tiles, n_split, nl_pad = _pick_tiling(
        nl, ck_pad, co_pad, max_lane_tile, vmem_tile_budget)
    n_half = n_tiles // n_split

    # ---- im2col glue (plain JAX, bf16): rows ordered (c_in, k) to match W.reshape ----
    xp = jnp.pad(x, ((0, 0), (0, 0), (padding, padding)))
    taps = jnp.stack(
        [xp[:, :, k:k + stride * L_out:stride] for k in range(K)], axis=0
    )  # (K, N, C_in, L_out)
    xcol = jnp.transpose(taps, (2, 0, 1, 3)).reshape(ck, nl)
    # Row ck = ones over the TRUE nl columns (zero in padding) -> column-sum row of G.
    xcol_ext = jnp.concatenate([xcol, jnp.ones((1, nl), xcol.dtype)], axis=0)
    xcol_ext = jnp.pad(xcol_ext, ((0, ck_pad - (ck + 1)), (0, nl_pad - nl)))
    xcol_ext = xcol_ext.astype(compute_dtype)

    w2d = jnp.pad(
        weight.reshape(C_out, ck), ((0, co_pad - C_out), (0, ck_pad - ck))
    ).astype(compute_dtype)     # padded col ck (ones row) is zero -> no contribution

    # Conv bias intentionally dropped: it cancels exactly under training-mode BatchNorm.
    del bias

    # ---- VMEM budgets derived from the actual double-buffered block sizes ----
    vmem1 = 2 * ck_pad * tile * 2 + 2 * ck_pad * ck_pad * 4
    vmem2 = (2 * ck_pad * tile * 2 + 2 * co_pad * tile * 4
             + 2 * co_pad * ck_pad * 2 + 2 * co_pad * 2 * 4)

    def _limit(b):
        return int(min(max(2 * b + (2 << 20), 16 << 20), 32 << 20))

    # ---- Pass 1: Gram stats (both TensorCores on v7x via leading parallel axis) ----
    if pass1_input_buffers != 2:
        xcol_spec1 = pl.BlockSpec((ck_pad, tile), lambda c, i: (0, c * n_half + i),
                                  pipeline_mode=pl.Buffered(pass1_input_buffers))
    else:
        xcol_spec1 = pl.BlockSpec((ck_pad, tile), lambda c, i: (0, c * n_half + i))

    g_parts = pl.pallas_call(
        _gram_kernel,
        out_shape=jax.ShapeDtypeStruct((n_split, ck_pad, ck_pad), jnp.float32),
        grid=(n_split, n_half),
        in_specs=[xcol_spec1],
        out_specs=pl.BlockSpec((None, ck_pad, ck_pad), lambda c, i: (c, 0, 0)),
        compiler_params=pltpu.CompilerParams(
            dimension_semantics=("parallel", "arbitrary"),
            vmem_limit_bytes=_limit(vmem1)),
    )(xcol_ext)

    # ---- Tiny per-channel math in plain JAX: fold BN into one scale/shift ----
    g = jnp.sum(g_parts, axis=0)                        # (ck_pad, ck_pad) f32
    wb = w2d[:C_out, :ck].astype(jnp.float32)           # bf16-rounded W, matches pass 2
    count = jnp.float32(nl)                             # true count (padding is zero)
    s = g[ck, :ck]                                      # sum over columns of xcol
    mean = (wb @ s) / count                             # per-channel E[y]
    ssq = jnp.sum((wb @ g[:ck, :ck]) * wb, axis=1)      # per-channel sum(y^2) = diag(W G W^T)
    var = jnp.maximum(ssq / count - mean * mean, 0.0)
    scale = gamma.astype(jnp.float32) * lax.rsqrt(var + eps)
    shift = beta.astype(jnp.float32) - mean * scale
    ss = jnp.pad(jnp.stack([scale, shift], axis=1), ((0, co_pad - C_out), (0, 0)))

    # ---- Pass 2: recompute y = W @ xcol, fused BN FMA + ReLU, write final output ----
    out2d = pl.pallas_call(
        _conv_bn_relu_kernel,
        out_shape=jax.ShapeDtypeStruct((co_pad, nl_pad), x.dtype),
        grid=(n_tiles,),
        in_specs=[
            pl.BlockSpec((ck_pad, tile), lambda i: (0, i)),
            pl.BlockSpec((co_pad, ck_pad), lambda i: (0, 0)),
            pl.BlockSpec((co_pad, 2), lambda i: (0, 0)),
        ],
        out_specs=pl.BlockSpec((co_pad, tile), lambda i: (0, i)),
        compiler_params=pltpu.CompilerParams(
            dimension_semantics=("parallel",),
            vmem_limit_bytes=_limit(vmem2)),
    )(xcol_ext, w2d, ss)

    out2d = out2d[:C_out, :nl]
    return jnp.transpose(out2d.reshape(C_out, N, L_out), (1, 0, 2))


def reference_forward(x, weight, bias, gamma, beta, *, stride, padding,
                      eps=1e-5, compute_dtype=jnp.float32):
    # Matches the PyTorch module (including the Conv1d bias, which cancels in BN).
    y = lax.conv_general_dilated(
        x.astype(compute_dtype), weight.astype(compute_dtype),
        window_strides=(stride,), padding=[(padding, padding)],
        dimension_numbers=("NCH", "OIH", "NCH"),
        preferred_element_type=jnp.float32)
    y = y + bias[None, :, None]
    mean = jnp.mean(y, axis=(0, 2), keepdims=True)
    var = jnp.mean((y - mean) ** 2, axis=(0, 2), keepdims=True)
    y_hat = (y - mean) * lax.rsqrt(var + eps)
    out = gamma[None, :, None] * y_hat + beta[None, :, None]
    return jnp.maximum(out, 0.0).astype(x.dtype)


if __name__ == "__main__":
    # Shapes consistent with ConvBlock(in_chan=4, out_chan=8, kernel=3, stride=1, padding=1)
    N, C_in, L = 2, 4, 16
    C_out, K, stride, padding = 8, 3, 1, 1

    key = jax.random.PRNGKey(0)
    kx, kw, kb = jax.random.split(key, 3)

    x = jax.random.normal(kx, (N, C_in, L), dtype=jnp.float32)

    # PyTorch-style init: Conv1d kaiming_uniform (fan_in, relu), bias uniform(+-1/sqrt(fan_in))
    fan_in = C_in * K
    w_bound = math.sqrt(6.0 / fan_in)
    weight = jax.random.uniform(kw, (C_out, C_in, K), jnp.float32, -w_bound, w_bound)
    b_bound = 1.0 / math.sqrt(fan_in)
    bias = jax.random.uniform(kb, (C_out,), jnp.float32, -b_bound, b_bound)
    gamma = jnp.ones((C_out,), jnp.float32)
    beta = jnp.zeros((C_out,), jnp.float32)

    out = conv_block_forward(x, weight, bias, gamma, beta, stride=stride, padding=padding)
    out = jax.block_until_ready(out)
    assert out.shape == (N, C_out, (L + 2 * padding - K) // stride + 1)

    # Reference with the same bf16 matmul operands (f32 accumulate) for a tight comparison.
    ref = reference_forward(x, weight, bias, gamma, beta, stride=stride, padding=padding,
                            compute_dtype=jnp.bfloat16)
    if not jnp.allclose(out, ref, rtol=2e-3, atol=2e-3):
        raise AssertionError("Pallas ConvBlock output mismatch vs reference")

    print("KERNEL_OK")
</pallas_src>

<mosaic_0001>
module attributes {stable_mosaic.version = 11 : i64} {
  func.func @_gram_kernel(%arg0: i32, %arg1: i32, %arg2: memref<16x128xbf16, #tpu.memory_space<vmem>>, %arg3: memref<1x16x16xf32, #tpu.memory_space<vmem>>) attributes {dimension_semantics = [#tpu.dimension_semantics<parallel>, #tpu.dimension_semantics<arbitrary>], iteration_bounds = array<i64: 1, 1>, scalar_prefetch = 0 : i64, scratch_operands = 0 : i64, tpu.core_type = #tpu.core_type<tc>, window_params = [{transform_indices = @transform_0, window_bounds = array<i64: 16, 128>}, {transform_indices = @transform_1, window_bounds = array<i64: 1, 16, 16>}]} {
    %c0_i32 = arith.constant 0 : i32
    %0 = arith.cmpi eq, %arg1, %c0_i32 : i32
    %1 = arith.extui %0 : i1 to i32
    %c0_i32_0 = arith.constant 0 : i32
    %2 = arith.cmpi ne, %1, %c0_i32_0 : i32
    scf.if %2 {
      %cst_8 = arith.constant 0.000000e+00 : f32
      %11 = vector.broadcast %cst_8 : f32 to vector<16x16xf32>
      %c0_9 = arith.constant 0 : index
      %c0_10 = arith.constant 0 : index
      %c0_11 = arith.constant 0 : index
      %12 = vector.load %arg3[%c0_9, %c0_10, %c0_11] : memref<1x16x16xf32, #tpu.memory_space<vmem>>, vector<1x16x16xf32>
      %13 = vector.shape_cast %12 : vector<1x16x16xf32> to vector<16x16xf32>
      %14 = vector.shape_cast %11 : vector<16x16xf32> to vector<1x16x16xf32>
      tpu.vector_store %arg3[%c0_9, %c0_10, %c0_11], %14 {strides = array<i32>} : memref<1x16x16xf32, #tpu.memory_space<vmem>>, vector<1x16x16xf32>,
    } else {
    }
    %c0 = arith.constant 0 : index
    %c0_1 = arith.constant 0 : index
    %3 = vector.load %arg2[%c0, %c0_1] : memref<16x128xbf16, #tpu.memory_space<vmem>>, vector<16x128xbf16>
    %c0_2 = arith.constant 0 : index
    %c0_3 = arith.constant 0 : index
    %c0_4 = arith.constant 0 : index
    %4 = vector.load %arg3[%c0_2, %c0_3, %c0_4] : memref<1x16x16xf32, #tpu.memory_space<vmem>>, vector<1x16x16xf32>
    %5 = vector.shape_cast %4 : vector<1x16x16xf32> to vector<16x16xf32>
    %cst = arith.constant dense<0.000000e+00> : vector<16x16xf32>
    %6 = tpu.matmul %3, %3, %cst {dimension_numbers = #tpu.dot_dimension_numbers<[1], [1], [0], [0], [0, 0, 1, 0], [], []>} : vector<16x128xbf16>, vector<16x128xbf16>, vector<16x16xf32> -> vector<16x16xf32>
    %7 = arith.addf %5, %6 : vector<16x16xf32>
    %c0_5 = arith.constant 0 : index
    %c0_6 = arith.constant 0 : index
    %c0_7 = arith.constant 0 : index
    %8 = vector.load %arg3[%c0_5, %c0_6, %c0_7] : memref<1x16x16xf32, #tpu.memory_space<vmem>>, vector<1x16x16xf32>
    %9 = vector.shape_cast %8 : vector<1x16x16xf32> to vector<16x16xf32>
    %10 = vector.shape_cast %7 : vector<16x16xf32> to vector<1x16x16xf32>
    tpu.vector_store %arg3[%c0_5, %c0_6, %c0_7], %10 {strides = array<i32>} : memref<1x16x16xf32, #tpu.memory_space<vmem>>, vector<1x16x16xf32>,
    return
  }
  func.func @transform_0(%arg0: i32, %arg1: i32) -> (i32, i32) {
    %c1_i32 = arith.constant 1 : i32
    %0 = arith.muli %arg0, %c1_i32 : i32
    %1 = arith.addi %0, %arg1 : i32
    %c0_i32 = arith.constant 0 : i32
    %c0_i32_0 = arith.constant 0 : i32
    return %c0_i32, %1 : i32, i32
  }
  func.func @transform_1(%arg0: i32, %arg1: i32) -> (i32, i32, i32) {
    %c0_i32 = arith.constant 0 : i32
    %c0_i32_0 = arith.constant 0 : i32
    %c0_i32_1 = arith.constant 0 : i32
    return %arg0, %c0_i32, %c0_i32_0 : i32, i32, i32
  }
}

</mosaic_0001>

<bundles_post_ra>
// kernel: tpu_custom_call.1
= control target key start
LH: loop header
LB: loop body
LE: loop exit
PB: predicated region body
PF: predicated region fallthrough
CT: control target
= control target key end

     0   :  { %6 = vsyncpa [#allocation3], 0  ;;  %s176_s0 = inlined_call_operand.hbm [shape: bf16[16,128], index: 0, kind: input, shape index: {}]   ;;  %s177_s1 = inlined_call_operand.hbm [shape: f32[1,16,16], index: 1, kind: output, shape index: {}]  }
   0x1   :  { %7 = vsyncpa [#allocation4], 0  ;;  %s15_s8 = sshll.u32 %s176_s0, 4  ;;  %s149_s9 = smov [#allocation2]   ;;  %s16_s8 = int_to_ptr.hbm [resolvable:$true] %s15_s8 }
   0x2   :  { %s17_s10 = sshll.u32 %s149_s9, 4  ;;  %s150_s11 = smov 64   ;;  %s18_s10 = int_to_ptr.vmem [resolvable:$true] %s17_s10 }
   0x3   :  { %s151_s12 = smov 4  }
   0x4   :  { %23 = dma.hbm_to_vmem [thread:$0]  %s16_s8, 128, %s18_s10, [#allocation3], %s150_s11, %s150_s11, %s151_s12  }
   0x5   :  { %145 = dma.done.wait [#allocation3], 128  }
   0x6   :  { %146 = vsyncadd [#allocation3], 4294967168  ;;  %vm34_vm0 = vcmask 130048   ;;  %v152_v0 = vmov 0.0   ;;  %v89_v1 = vld [vmem:[#allocation2] sm:$0xff]  ;;  %s153_s0 = smov [#allocation5]  }
   0x7   :  { %35 = vst.msk [vmem:[#allocation5] sm:$0xff] %vm34_vm0, %v152_v0  ;;  %54 = vmatpush.bf16.xpose.msra.mxu0 %v89_v1  ;;  %s70_s13 = sshll.u32 %s153_s0, 4  ;;  %s72_s16 = sshll.u32 %s177_s1, 4  ;;  %s71_s13 = int_to_ptr.vmem [resolvable:$true] %s70_s13  ;;  %s73_s16 = int_to_ptr.hbm [resolvable:$true] %s72_s16 }
   0x8   :  { %36 = vst.msk [vmem:[#allocation5 + $0x8] sm:$0xff] %vm34_vm0, %v152_v0  ;;  %s154_s17 = smov 128   ;;  %s155_s18 = smov 8  }
   0xe   :  { %55 = vmatmul.bf16.vlgmr.msra.gmra.mxu0 %v89_v1  ;;  %v39_v2 = vld [vmem:[#allocation5] sm:$0xff] }
   0xf   :  { %v40_v5 = vld [vmem:[#allocation5 + $0x8] sm:$0xff] }
  0x8b   :  { %v56_v3 = vpop.f32.mrf.mxu0 }
  0x8c   :  { %v61_v4 = vadd.f32 %v56_v3, %v39_v2 }
  0x8e   :  { %64 = vst.msk [vmem:[#allocation5] sm:$0xff] %vm34_vm0, %v61_v4 }
  0x93   :  { %v58_v6 = vpop.f32.mrf.mxu0 }
  0x94   :  { %v62_v7 = vadd.f32 %v58_v6, %v40_v5 }
  0x96   :  { %65 = vst.msk [vmem:[#allocation5 + $0x8] sm:$0xff] %vm34_vm0, %v62_v7 }
  0x97   :  { %78 = dma.vmem_to_hbm [thread:$0]  %s71_s13, 256, %s73_s16, [#allocation4], %s154_s17, %s154_s17, %s155_s18  }
  0x98   :  { %147 = dma.done.wait [#allocation4], 256  }
  0x99   :  { %148 = vsyncadd [#allocation4], 4294967040 }
  0x9a   :  { %83 = vsyncpa [#allocation3], 1 }
  0x9b   :  { %84 = vsyncpa [#allocation4], 1 }

</bundles_post_ra>
